<compile_context>
chip_gen: v7x
topology: tpu7x:2x2x1
jax: 0.10.0
libtpu: 0.0.40
codegen_flags: <defaults>
</compile_context>

<pallas_src>
import jax
import jax.numpy as jnp
from jax.experimental import pallas as pl
from jax.experimental.pallas import tpu as pltpu


def simplenet_kernel(x_ref, wconv_ref, bconv_ref, wfc_ref, bfc_ref, o_ref):
    # x_ref:     (25, TILE_N) bf16   -- flattened 5x5 patches, batch on the lane axis
    # wconv_ref: (10, 25)     bf16   -- conv weight (out_ch, in_patch)
    # bconv_ref: (10, 1)      f32    -- conv bias (broadcasts over lanes)
    # wfc_ref:   (1, 10)      f32    -- fc weight
    # bfc_ref:   (1,)         f32    -- fc bias, SMEM scalar
    # o_ref:     (1, TILE_N)  f32
    h = jnp.dot(wconv_ref[...], x_ref[...],
                preferred_element_type=jnp.float32)                 # MXU, f32 acc
    h = jnp.maximum(h + bconv_ref[...], 0.0)                        # (10, TILE_N) f32
    y = jnp.dot(wfc_ref[...], h,
                preferred_element_type=jnp.float32)                 # (1, TILE_N) f32
    y = y + bfc_ref[0]
    o_ref[...] = jax.nn.sigmoid(y)                                  # exp on EUP


def simplenet_forward(x_nchw, w_conv, b_conv, w_fc, b_fc, *, tile_n=512):
    """x_nchw: (N, 1, 5, 5) float32. Returns (N, 1) float32."""
    N = x_nchw.shape[0]
    # Lane-aligned batch tile (multiple of 128); pad the batch to whole tiles.
    tile_n = max(128, (tile_n // 128) * 128)
    n_pad = pl.cdiv(N, tile_n) * tile_n
    grid = (n_pad // tile_n,)

    # Glue: flatten + transpose so the batch dim is the fast (lane) axis.
    x_t = x_nchw.reshape(N, 25).astype(jnp.bfloat16).T              # (25, N) bf16
    if n_pad != N:
        x_t = jnp.pad(x_t, ((0, 0), (0, n_pad - N)))
    wconv = w_conv.reshape(10, 25).astype(jnp.bfloat16)             # (10, 25) bf16
    bconv = b_conv.reshape(10, 1).astype(jnp.float32)               # (10, 1)
    wfc = w_fc.reshape(1, 10).astype(jnp.float32)                   # (1, 10)
    bfc = b_fc.reshape(1).astype(jnp.float32)                       # (1,) -> SMEM

    cost = pl.CostEstimate(
        flops=2 * n_pad * 25 * 10 + 2 * n_pad * 10,
        transcendentals=n_pad,
        bytes_accessed=(n_pad * 25 * 2          # bf16 input stream
                        + n_pad * 4             # f32 output
                        + 10 * 25 * 2 + 10 * 4 + 10 * 4 + 4),  # resident params
    )

    out = pl.pallas_call(
        simplenet_kernel,
        out_shape=jax.ShapeDtypeStruct((1, n_pad), jnp.float32),
        grid_spec=pltpu.PrefetchScalarGridSpec(
            num_scalar_prefetch=0,
            grid=grid,
            in_specs=[
                pl.BlockSpec((25, tile_n), lambda i: (0, i)),        # x tile (streamed)
                pl.BlockSpec((10, 25), lambda i: (0, 0)),            # conv W (resident)
                pl.BlockSpec((10, 1), lambda i: (0, 0)),             # conv b (resident)
                pl.BlockSpec((1, 10), lambda i: (0, 0)),             # fc W  (resident)
                pl.BlockSpec(memory_space=pltpu.MemorySpace.SMEM),   # fc b  (SMEM scalar)
            ],
            out_specs=pl.BlockSpec((1, tile_n), lambda i: (0, i)),
        ),
        compiler_params=pltpu.CompilerParams(
            dimension_semantics=("parallel",)),
        cost_estimate=cost,
    )(x_t, wconv, bconv, wfc, bfc)

    return out[:, :N].T                                              # (N, 1)


def reference_forward(x_nchw, w_conv, b_conv, w_fc, b_fc):
    """Pure-JAX reference with the same bf16 input/weight quantization as the kernel."""
    N = x_nchw.shape[0]
    x_flat = x_nchw.reshape(N, 25).astype(jnp.bfloat16).astype(jnp.float32)
    wc = w_conv.reshape(10, 25).astype(jnp.bfloat16).astype(jnp.float32)
    h = x_flat @ wc.T + b_conv[None, :]
    h = jnp.maximum(h, 0.0)
    y = h @ w_fc.reshape(1, 10).T + b_fc[None, :]
    return jax.nn.sigmoid(y)


if __name__ == "__main__":
    key = jax.random.PRNGKey(0)
    k_x, k_wc, k_bc, k_wf, k_bf = jax.random.split(key, 5)

    # Parameter shapes match nn.Conv2d(1, 10, 5) / nn.Linear(10, 1).
    w_conv = 0.1 * jax.random.normal(k_wc, (10, 1, 5, 5), dtype=jnp.float32)
    b_conv = 0.1 * jax.random.normal(k_bc, (10,), dtype=jnp.float32)
    w_fc = 0.1 * jax.random.normal(k_wf, (1, 10), dtype=jnp.float32)
    b_fc = 0.1 * jax.random.normal(k_bf, (1,), dtype=jnp.float32)

    # N=2 matches the module's implied demo shape; N=300 exercises the multi-step
    # pipelined grid (3 tiles of 128).
    for n, tile in ((2, 128), (300, 128)):
        x = jax.random.normal(jax.random.fold_in(k_x, n), (n, 1, 5, 5),
                              dtype=jnp.float32)
        out = simplenet_forward(x, w_conv, b_conv, w_fc, b_fc, tile_n=tile)
        out = jax.block_until_ready(out)
        ref = reference_forward(x, w_conv, b_conv, w_fc, b_fc)
        assert out.shape == (n, 1), out.shape
        assert jnp.allclose(out, ref, atol=1e-4, rtol=1e-4), (out, ref)

    print("KERNEL_OK")
</pallas_src>

<mosaic_0001>
module attributes {stable_mosaic.version = 11 : i64} {
  func.func @simplenet_kernel(%arg0: i32, %arg1: memref<25x128xbf16, #tpu.memory_space<vmem>>, %arg2: memref<10x25xbf16, #tpu.memory_space<vmem>>, %arg3: memref<10x1xf32, #tpu.memory_space<vmem>>, %arg4: memref<1x10xf32, #tpu.memory_space<vmem>>, %arg5: memref<1xf32, #tpu.memory_space<smem>>, %arg6: memref<1x128xf32, #tpu.memory_space<vmem>>) attributes {dimension_semantics = [#tpu.dimension_semantics<parallel>], iteration_bounds = array<i64: 1>, scalar_prefetch = 0 : i64, scratch_operands = 0 : i64, tpu.core_type = #tpu.core_type<tc>, window_params = [{transform_indices = @transform_0, window_bounds = array<i64: 25, 128>}, {pipeline_mode = #tpu.pipeline_mode<synchronous>, transform_indices = @transform_1, window_bounds = array<i64: 10, 25>}, {pipeline_mode = #tpu.pipeline_mode<synchronous>, transform_indices = @transform_2, window_bounds = array<i64: 10, 1>}, {pipeline_mode = #tpu.pipeline_mode<synchronous>, transform_indices = @transform_3, window_bounds = array<i64: 1, 10>}, {transform_indices = @transform_4, window_bounds = array<i64: 1>}, {transform_indices = @transform_5, window_bounds = array<i64: 1, 128>}]} {
    %c0 = arith.constant 0 : index
    %c0_0 = arith.constant 0 : index
    %0 = vector.load %arg2[%c0, %c0_0] : memref<10x25xbf16, #tpu.memory_space<vmem>>, vector<10x25xbf16>
    %c0_1 = arith.constant 0 : index
    %c0_2 = arith.constant 0 : index
    %1 = vector.load %arg1[%c0_1, %c0_2] : memref<25x128xbf16, #tpu.memory_space<vmem>>, vector<25x128xbf16>
    %cst = arith.constant dense<0.000000e+00> : vector<10x128xf32>
    %2 = tpu.matmul %0, %1, %cst {dimension_numbers = #tpu.dot_dimension_numbers<[1], [0], [0], [1], [0, 0, 1, 1], [], []>} : vector<10x25xbf16>, vector<25x128xbf16>, vector<10x128xf32> -> vector<10x128xf32>
    %c0_3 = arith.constant 0 : index
    %c0_4 = arith.constant 0 : index
    %3 = vector.load %arg3[%c0_3, %c0_4] : memref<10x1xf32, #tpu.memory_space<vmem>>, vector<10x1xf32>
    %4 = vector.broadcast %3 : vector<10x1xf32> to vector<10x128xf32>
    %5 = arith.addf %2, %4 : vector<10x128xf32>
    %cst_5 = arith.constant 0.000000e+00 : f32
    %6 = vector.broadcast %cst_5 : f32 to vector<10x128xf32>
    %7 = arith.maximumf %5, %6 : vector<10x128xf32>
    %c0_6 = arith.constant 0 : index
    %c0_7 = arith.constant 0 : index
    %8 = vector.load %arg4[%c0_6, %c0_7] : memref<1x10xf32, #tpu.memory_space<vmem>>, vector<1x10xf32>
    %cst_8 = arith.constant dense<0.000000e+00> : vector<1x128xf32>
    %9 = tpu.matmul %8, %7, %cst_8 {dimension_numbers = #tpu.dot_dimension_numbers<[1], [0], [0], [1], [0, 0, 1, 1], [], []>} : vector<1x10xf32>, vector<10x128xf32>, vector<1x128xf32> -> vector<1x128xf32>
    %c0_9 = arith.constant 0 : index
    %10 = memref.load %arg5[%c0_9] : memref<1xf32, #tpu.memory_space<smem>>
    %11 = vector.broadcast %10 : f32 to vector<1x128xf32>
    %12 = arith.addf %9, %11 : vector<1x128xf32>
    %13 = arith.negf %12 : vector<1x128xf32>
    %14 = math.exp %13 : vector<1x128xf32>
    %cst_10 = arith.constant 1.000000e+00 : f32
    %15 = vector.broadcast %cst_10 : f32 to vector<1x128xf32>
    %16 = arith.addf %15, %14 : vector<1x128xf32>
    %17 = arith.divf %15, %16 : vector<1x128xf32>
    %c0_11 = arith.constant 0 : index
    %c0_12 = arith.constant 0 : index
    %18 = vector.load %arg6[%c0_11, %c0_12] : memref<1x128xf32, #tpu.memory_space<vmem>>, vector<1x128xf32>
    tpu.vector_store %arg6[%c0_11, %c0_12], %17 {strides = array<i32>} : memref<1x128xf32, #tpu.memory_space<vmem>>, vector<1x128xf32>,
    return
  }
  func.func @transform_0(%arg0: i32) -> (i32, i32) {
    %c0_i32 = arith.constant 0 : i32
    %c0_i32_0 = arith.constant 0 : i32
    return %c0_i32, %arg0 : i32, i32
  }
  func.func @transform_1(%arg0: i32) -> (i32, i32) {
    %c0_i32 = arith.constant 0 : i32
    %c0_i32_0 = arith.constant 0 : i32
    %c0_i32_1 = arith.constant 0 : i32
    return %c0_i32, %c0_i32_0 : i32, i32
  }
  func.func @transform_2(%arg0: i32) -> (i32, i32) {
    %c0_i32 = arith.constant 0 : i32
    %c0_i32_0 = arith.constant 0 : i32
    %c0_i32_1 = arith.constant 0 : i32
    return %c0_i32, %c0_i32_0 : i32, i32
  }
  func.func @transform_3(%arg0: i32) -> (i32, i32) {
    %c0_i32 = arith.constant 0 : i32
    %c0_i32_0 = arith.constant 0 : i32
    %c0_i32_1 = arith.constant 0 : i32
    return %c0_i32, %c0_i32_0 : i32, i32
  }
  func.func @transform_4(%arg0: i32) -> i32 {
    %c0_i32 = arith.constant 0 : i32
    %c0_i32_0 = arith.constant 0 : i32
    return %c0_i32 : i32
  }
  func.func @transform_5(%arg0: i32) -> (i32, i32) {
    %c0_i32 = arith.constant 0 : i32
    %c0_i32_0 = arith.constant 0 : i32
    return %c0_i32, %arg0 : i32, i32
  }
}

</mosaic_0001>

<bundles_post_ra>
// kernel: tpu_custom_call.1
= control target key start
LH: loop header
LB: loop body
LE: loop exit
PB: predicated region body
PF: predicated region fallthrough
CT: control target
= control target key end

     0   :  { %v284_v1 = vmov 0.0   ;;  %vm61_vm0 = vcmask 1043456   ;;  %vm62_vm1 = vcmask 1044480   ;;  %v285_v3 = vmov 65535   ;;  %s354_s0 = inlined_call_operand.vmem [shape: bf16[25,128], index: 0, kind: input, shape index: {}]   ;;  %s355_s1 = inlined_call_operand.vmem [shape: bf16[10,25], index: 1, kind: input, shape index: {}]   ;;  %s356_s2 = inlined_call_operand.vmem [shape: f32[10,1], index: 2, kind: input, shape index: {}]   ;;  %s357_s3 = inlined_call_operand.vmem [shape: f32[1,10], index: 3, kind: input, shape index: {}]   ;;  %s358_s4 = inlined_call_operand.<no memory space> [shape: f32[1], index: 4, kind: input, shape index: {}]   ;;  %s359_s5 = inlined_call_operand.hbm [shape: f32[1,128], index: 5, kind: output, shape index: {}]  }
   0x1   :  { %v253_v0 = vld [vmem:[%s354_s0] sm:$0xff]   ;;  %226 = vmatprep.subr.bf16.mxu0 %v284_v1  ;;  %v254_v2 = vld [vmem:[%s354_s0 + $0x8] sm:$0x1f]   ;;  %v63_v4 = vsel %vm61_vm0, 4294967295, %v285_v3  ;;  %vm286_vm2 = vmmov 0   ;;  %v287_v8 = vmov 0  }
   0x2   :  { %227 = vmatpush3.bf16.msra.mxu0 %v253_v0  ;;  %230 = vmatprep.mubr.msk.bf16.mxu0 %vm286_vm2, %v284_v1  ;;  %v64_v5 = vsel %vm62_vm1, %v63_v4, 0  ;;  %v29_v6 = vld [vmem:[%s356_s2] sm:$0xff] }
   0x3   :  { %228 = vmatprep.subr.bf16.mxu0 %v284_v1  ;;  %238 = vmatprep.mubr.msk.f32.mxu1 %vm286_vm2, %v284_v1  ;;  %v66_v7 = vand.u32 %v254_v2, %v64_v5 }
   0x4   :  { %252 = vset.pattern.permute.xlu0 %v287_v8 }
   0x5   :  { %11 = vsyncpa [#allocation4], 0  ;;  %v255_v9 = vld [vmem:[%s355_s1] sm:$0x1f]   ;;  %33 = vperm.xlu0 %252, %v29_v6   ;;  %vm57_vm3 = vcmask 203776   ;;  %v288_v11 = vmov 0.0|0.0   ;;  %v113_v24 = vstv %s358_s4 }
   0x6   :  { %229 = vmatpush3.bf16.msra.mxu0 %v66_v7  ;;  %v30_v10 = vld [vmem:[%s356_s2 + $0x8] sm:$0x3]  ;;  %241 = vmatprep.subr.bf16.mxu1 %v288_v11  ;;  %vm118_vm4 = vcmask 1041408   ;;  %vm289_vm5 = vmmov 1   ;;  %v111_v23 = vld [vmem:[%s357_s3] sm:$0x1] }
   0x7   :  { %vm243_vm6 = vmpackc.low %vm118_vm4, %vm289_vm5  ;;  %vm114_vm7 = vcmask 80896   ;;  %s290_s29 = smov [#allocation3]  }
   0x8   :  { %s205_s30 = sshll.u32 %s290_s29, 4  ;;  %s206_s30 = int_to_ptr.vmem [resolvable:$true] %s205_s30 }
   0x9   :  { %231 = vmatmul.mubr.msk.bf16.vlgmr.msra.gmra.mrb[0].mxu0 %vm57_vm3, %v255_v9  ;;  %38 = vperm.xlu0 %252, %v30_v10   ;;  %s260_s3 = scalar_lea.vmem %s206_s30, 16  ;;  %s264_s6 = scalar_lea.vmem %s206_s30, 32 }
   0xa   :  { %p261_p0 = scmp.ne.s32.totalorder %s206_s30, %s260_s3  ;;  %p265_p1 = scmp.lt.s32.totalorder %s206_s30, %s206_s30 }
   0xb   :  { %p266_p2 = scmp.lt.s32.totalorder %s264_s6, %s260_s3 }
   0xd   :  { %p267_p3 = por %p266_p2, %p265_p1 }
   0xf   :  { %p268_p4 = pnand %p267_p3, %p261_p0 }
  0x84   :  { %v34_v12 = vpop.permute.xlu0 %33 }
  0x88   :  { %v39_v16 = vpop.permute.xlu0 %38 }
  0xdc   :  { %v102_v13 = vpop.f32.mrb[0].mxu0 }
  0xdd   :  { %v103_v14 = vadd.f32 %v102_v13, %v34_v12  ;;  %v232_v15 = vpop.f32.mrb[1].mxu0 }
  0xde   :  { %v105_v17 = vpop.f32.mrb[2].mxu0 }
  0xdf   :  { %v106_v18 = vadd.f32 %v105_v17, %v39_v16  ;;  %v233_v19 = vpop.f32.mrb[3].mxu0  ;;  %v109_v20 = vmax.f32 %v103_v14, 0.0 }
  0xe1   :  { %v110_v21 = vmax.f32 %v106_v18, 0.0 }
  0xe3   :  { %v242_v22 = vpack.c.bf16 %v110_v21, %v109_v20 }
  0xe5   :  { %244 = vmatpush3.bf16.msk.msra.mxu1 %vm243_vm6, %v242_v22 }
  0xe8   :  { %239 = vmatmul.mubr.msk.f32.vlgmr.msra.gmra.mrb[0].mxu1 %vm114_vm7, %v111_v23 }
 0x1bb   :  { %v188_v25 = vpop.f32.mrb[0].mxu1 }
 0x1bc   :  { %v189_v26 = vadd.f32 %v188_v25, %v113_v24  ;;  %v240_v27 = vpop.f32.mrb[1].mxu1 }
 0x1be   :  { %v219_v28 = vmul.f32 -1.442695, %v189_v26 }
 0x1c0   :  { %256 = vpow2.f32 %v219_v28 }
 0x1ca   :  { %v257_v29 = vpop.eup %256 }
 0x1cb   :  { %v195_v30 = vadd.f32 1.0, %v257_v29 }
 0x1cd   :  { %258 = vrcp.f32 %v195_v30 }
 0x1d7   :  { %v259_v31 = vpop.eup %258 }
 0x1d8   :  { %198 = vst [vmem:[#allocation3] sm:$0x1] %v259_v31 }
 0x1d9   :  { %271 = shalt.err (!%p268_p4)
}
 0x1da   :  { %s272_s8 = scalar_lea.hbm %s359_s5, 16 }
 0x1db   :  { %p273_p5 = scmp.ne.s32.totalorder %s359_s5, %s272_s8  ;;  %p276_p6 = scmp.lt.u32.totalorder %s272_s8, %s359_s5 }
 0x1dd   :  { %p278_p7 = pnand %p276_p6, %p273_p5 }
 0x1df   :  { %281 = shalt.err (!%p278_p7)
}
 0x1e0   :  { %208 = dma.vmem_to_hbm [thread:$0]  %s206_s30, 16, %s359_s5, [#allocation4]  }
 0x1e1   :  { %282 = dma.done.wait [#allocation4], 16  }
 0x1e2   :  { %283 = vsyncadd [#allocation4], 4294967280 }
 0x1e3   :  { %212 = vsyncpa [#allocation4], 1 }

</bundles_post_ra>
